<compile_context>
chip_gen: v7x
topology: tpu7x:2x2x1
jax: 0.10.0
libtpu: 0.0.40
codegen_flags: <defaults>
</compile_context>

<pallas_src>
import functools
import numpy as np
import jax
import jax.numpy as jnp
from jax.experimental import pallas as pl
from jax.experimental.pallas import tpu as pltpu


# ----------------------------------------------------------------------------
# Parameter construction (mirrors RBFLayer.__init__).
# ----------------------------------------------------------------------------
def softplus_inverse(x):
    return x + np.log(-np.expm1(-x))


def _softplus(x):
    return np.log1p(np.exp(-np.abs(x))) + np.maximum(x, 0.0)


def make_rbf_params(K=64, cutoff=10.0, edge_types=29 ** 2, dtype=np.float32):
    """Deterministic parameter init mirroring RBFLayer.__init__."""
    centers = _softplus(softplus_inverse(np.linspace(1.0, np.exp(-cutoff), K))).astype(dtype)
    widths = _softplus(
        np.full((K,), softplus_inverse(0.5 / (1.0 - np.exp(-cutoff) / K) ** 2))
    ).astype(dtype)
    mul_weight = np.ones((edge_types, 1), dtype=dtype)    # nn.init.constant_(mul, 1)
    bias_weight = np.zeros((edge_types, 1), dtype=dtype)  # nn.init.constant_(bias, 0)
    return {
        "centers": jnp.asarray(centers),
        "widths": jnp.asarray(widths),
        "mul_weight": jnp.asarray(mul_weight),
        "bias_weight": jnp.asarray(bias_weight),
    }


# ----------------------------------------------------------------------------
# Kernel helpers / kernels.
# ----------------------------------------------------------------------------
def _expand_pair_lanes(cols, lanes, K):
    """(rows, G) value -> (rows, lanes) value; column j fills lanes [j*K, (j+1)*K)."""
    rows, G = cols.shape
    out = jnp.broadcast_to(cols[:, 0:1], (rows, lanes))
    if G > 1:
        lane = jax.lax.broadcasted_iota(jnp.int32, (rows, lanes), 1)
        for j in range(1, G):
            out = jnp.where(lane >= j * K,
                            jnp.broadcast_to(cols[:, j:j + 1], (rows, lanes)),
                            out)
    return out


def _rbf_core(d, centers_row, widths_row, inv_cutoff):
    # NOTE: identical arithmetic ordering to rbf_forward_ref (keeps the
    # near-cancellation cutoff quintic consistent between kernel and ref).
    x = d * inv_cutoff
    x3 = x * x * x
    x4 = x3 * x
    x5 = x4 * x
    cut = jnp.where(x < 1.0,
                    1.0 - 6.0 * x5 + 15.0 * x4 - 10.0 * x3,
                    jnp.zeros_like(x))
    diff = jnp.exp(-d) - centers_row
    return cut * jnp.exp(-widths_row * diff * diff)


def _rbf_kernel(d_ref, c_ref, w_ref, o_ref, *, inv_cutoff, K):
    lanes = o_ref.shape[1]
    d = _expand_pair_lanes(d_ref[...], lanes, K)
    o_ref[...] = _rbf_core(d, c_ref[...], w_ref[...], inv_cutoff).astype(o_ref.dtype)


def _rbf_kernel_affine(d_ref, m_ref, b_ref, c_ref, w_ref, o_ref, *, inv_cutoff, K):
    lanes = o_ref.shape[1]
    # Affine on the narrow (rows, G) form, then a single lane expansion
    # (instead of expanding mul, bias and d separately).
    d_n = m_ref[...] * d_ref[...] + b_ref[...]
    d = _expand_pair_lanes(d_n, lanes, K)
    o_ref[...] = _rbf_core(d, c_ref[...], w_ref[...], inv_cutoff).astype(o_ref.dtype)


# ----------------------------------------------------------------------------
# Wrapper.
# ----------------------------------------------------------------------------
def _round_up(a, b):
    return ((a + b - 1) // b) * b


def rbf_forward(D, edge_types, params, *, cutoff=10.0, use_affine_linear=False,
                block_rows=4096, out_dtype=jnp.float32):
    """Pallas implementation of RBFLayer.forward.

    D:          float array, arbitrary shape (e.g. (B, N, N)).
    edge_types: int32 array, same shape as D (only used when use_affine_linear).
    Returns     array of shape D.shape + (K,) with dtype out_dtype.
    """
    K = int(params["centers"].shape[0])
    if 128 % K == 0:
        G = 128 // K            # pairs packed per lane-dense output row
    elif K % 128 == 0:
        G = 1                   # already lane-dense
    else:
        raise ValueError("rbf_forward requires K to divide 128 or be a multiple of 128")
    lanes = K * G

    orig_shape = D.shape
    d_flat = D.reshape(-1).astype(jnp.float32)
    M = int(d_flat.shape[0])
    if M == 0:
        return jnp.zeros(orig_shape + (K,), out_dtype)

    R = (M + G - 1) // G                               # rows of the (R, lanes) output view
    block_rows = _round_up(max(int(block_rows), 8), 8)
    bm = min(block_rows, _round_up(R, 8))              # multiple of 8
    R_pad = R if bm <= R else bm                       # pad rows only if one block > R
    pad_elems = R_pad * G - M                          # 0 in the common (even M) case

    if use_affine_linear:
        # TODO(synk): the nn.Embedding gather (data-dependent row lookup) stays
        # in XLA glue; the affine itself is fused into the kernel.
        et_flat = edge_types.reshape(-1)
        mul_flat = params["mul_weight"][et_flat, 0].astype(jnp.float32)
        bias_flat = params["bias_weight"][et_flat, 0].astype(jnp.float32)

    if pad_elems:
        d_flat = jnp.pad(d_flat, (0, pad_elems))
        if use_affine_linear:
            mul_flat = jnp.pad(mul_flat, (0, pad_elems))
            bias_flat = jnp.pad(bias_flat, (0, pad_elems))

    d2 = d_flat.reshape(R_pad, G)
    centers_t = jnp.tile(params["centers"].astype(jnp.float32), G).reshape(1, lanes)
    widths_t = jnp.tile(params["widths"].astype(jnp.float32), G).reshape(1, lanes)

    pair_spec = lambda: pl.BlockSpec((bm, G), lambda i: (i, 0))
    const_spec = lambda: pl.BlockSpec((1, lanes), lambda i: (0, 0))   # resident

    if use_affine_linear:
        kernel = functools.partial(_rbf_kernel_affine, inv_cutoff=float(1.0 / cutoff), K=K)
        in_specs = [pair_spec(), pair_spec(), pair_spec(), const_spec(), const_spec()]
        operands = (d2, mul_flat.reshape(R_pad, G), bias_flat.reshape(R_pad, G),
                    centers_t, widths_t)
        n_streams = 3
    else:
        kernel = functools.partial(_rbf_kernel, inv_cutoff=float(1.0 / cutoff), K=K)
        in_specs = [pair_spec(), const_spec(), const_spec()]
        operands = (d2, centers_t, widths_t)
        n_streams = 1

    out_itemsize = jnp.dtype(out_dtype).itemsize
    cost = pl.CostEstimate(
        flops=16 * M * K,
        transcendentals=2 * M * K,
        bytes_accessed=4 * n_streams * M + out_itemsize * M * K,
    )

    out = pl.pallas_call(
        kernel,
        out_shape=jax.ShapeDtypeStruct((R_pad, lanes), out_dtype),
        grid_spec=pltpu.PrefetchScalarGridSpec(
            num_scalar_prefetch=0,
            grid=(pl.cdiv(R_pad, bm),),        # ragged final block handled by Pallas
            in_specs=in_specs,
            out_specs=pl.BlockSpec((bm, lanes), lambda i: (i, 0)),
        ),
        compiler_params=pltpu.CompilerParams(
            dimension_semantics=("parallel",),
            vmem_limit_bytes=32 * 1024 * 1024,
        ),
        cost_estimate=cost,
    )(*operands)

    out_flat = out.reshape(R_pad * G, K)       # free row-major reshape
    if R_pad * G != M:
        out_flat = out_flat[:M]                # only for odd / tiny remainders
    return out_flat.reshape(orig_shape + (K,))


# ----------------------------------------------------------------------------
# Pure-JAX reference (same arithmetic ordering as the kernel).
# ----------------------------------------------------------------------------
def rbf_forward_ref(D, edge_types, params, *, cutoff=10.0, use_affine_linear=False):
    d = D[..., None].astype(jnp.float32)
    if use_affine_linear:
        d = params["mul_weight"][edge_types] * d + params["bias_weight"][edge_types]
    inv_cutoff = 1.0 / cutoff
    x = d * inv_cutoff
    x3 = x * x * x
    x4 = x3 * x
    x5 = x4 * x
    cut = jnp.where(x < 1.0,
                    1.0 - 6.0 * x5 + 15.0 * x4 - 10.0 * x3,
                    jnp.zeros_like(x))
    diff = jnp.exp(-d) - params["centers"]
    return cut * jnp.exp(-params["widths"] * diff * diff)


if __name__ == "__main__":
    key = jax.random.PRNGKey(0)
    B, N, K = 2, 8, 64
    cutoff = 10.0
    edge_vocab = 29 ** 2

    kd, ke = jax.random.split(key)
    D = jax.random.uniform(kd, (B, N, N), jnp.float32, minval=0.0, maxval=12.0)
    edge_types = jax.random.randint(ke, (B, N, N), 0, edge_vocab, dtype=jnp.int32)

    params = make_rbf_params(K=K, cutoff=cutoff, edge_types=edge_vocab)

    # Default path (use_affine_linear=False): only the d stream is read.
    out = rbf_forward(D, edge_types, params, cutoff=cutoff, use_affine_linear=False)
    out = jax.block_until_ready(out)
    ref = rbf_forward_ref(D, edge_types, params, cutoff=cutoff, use_affine_linear=False)
    assert out.shape == (B, N, N, K)
    np.testing.assert_allclose(np.asarray(out), np.asarray(ref), rtol=1e-4, atol=1e-5)

    # Affine path (embedding gather in XLA glue, affine fused in kernel).
    out_aff = rbf_forward(D, edge_types, params, cutoff=cutoff, use_affine_linear=True)
    out_aff = jax.block_until_ready(out_aff)
    ref_aff = rbf_forward_ref(D, edge_types, params, cutoff=cutoff, use_affine_linear=True)
    np.testing.assert_allclose(np.asarray(out_aff), np.asarray(ref_aff), rtol=1e-4, atol=1e-5)

    # Ragged / odd-remainder case (exercises the partial final block + tail pad).
    D_odd = jax.random.uniform(key, (3, 5, 5), jnp.float32, minval=0.0, maxval=12.0)
    et_odd = jnp.zeros((3, 5, 5), jnp.int32)
    out_odd = jax.block_until_ready(
        rbf_forward(D_odd, et_odd, params, cutoff=cutoff,
                    use_affine_linear=False, block_rows=16))
    ref_odd = rbf_forward_ref(D_odd, et_odd, params, cutoff=cutoff, use_affine_linear=False)
    np.testing.assert_allclose(np.asarray(out_odd), np.asarray(ref_odd), rtol=1e-4, atol=1e-5)

    print("KERNEL_OK")
</pallas_src>

<mosaic_0001>
module attributes {stable_mosaic.version = 11 : i64} {
  func.func @_rbf_kernel(%arg0: i32, %arg1: memref<64x2xf32, #tpu.memory_space<vmem>>, %arg2: memref<1x128xf32, #tpu.memory_space<vmem>>, %arg3: memref<1x128xf32, #tpu.memory_space<vmem>>, %arg4: memref<64x128xf32, #tpu.memory_space<vmem>>) attributes {dimension_semantics = [#tpu.dimension_semantics<parallel>], iteration_bounds = array<i64: 1>, scalar_prefetch = 0 : i64, scratch_operands = 0 : i64, tpu.core_type = #tpu.core_type<tc>, window_params = [{transform_indices = @transform_0, window_bounds = array<i64: 64, 2>}, {pipeline_mode = #tpu.pipeline_mode<synchronous>, transform_indices = @transform_1, window_bounds = array<i64: 1, 128>}, {pipeline_mode = #tpu.pipeline_mode<synchronous>, transform_indices = @transform_2, window_bounds = array<i64: 1, 128>}, {transform_indices = @transform_3, window_bounds = array<i64: 64, 128>}]} {
    %c0 = arith.constant 0 : index
    %c0_0 = arith.constant 0 : index
    %0 = vector.load %arg1[%c0, %c0_0] : memref<64x2xf32, #tpu.memory_space<vmem>>, vector<64x2xf32>
    %1 = vector.extract_strided_slice %0 {offsets = [0, 0], sizes = [64, 1], strides = [1, 1]} : vector<64x2xf32> to vector<64x1xf32>
    %2 = vector.shape_cast %1 : vector<64x1xf32> to vector<64x1xf32>
    %3 = vector.broadcast %2 : vector<64x1xf32> to vector<64x128xf32>
    %4 = tpu.iota {dimensions = array<i32: 1>} : vector<64x128xi32>
    %c64_i32 = arith.constant 64 : i32
    %5 = vector.broadcast %c64_i32 : i32 to vector<64x128xi32>
    %6 = arith.cmpi sge, %4, %5 : vector<64x128xi32>
    %7 = vector.extract_strided_slice %0 {offsets = [0, 1], sizes = [64, 1], strides = [1, 1]} : vector<64x2xf32> to vector<64x1xf32>
    %8 = vector.shape_cast %7 : vector<64x1xf32> to vector<64x1xf32>
    %9 = vector.broadcast %8 : vector<64x1xf32> to vector<64x128xf32>
    %10 = arith.select %6, %9, %3 : vector<64x128xi1>, vector<64x128xf32>
    %c0_1 = arith.constant 0 : index
    %c0_2 = arith.constant 0 : index
    %11 = vector.load %arg2[%c0_1, %c0_2] : memref<1x128xf32, #tpu.memory_space<vmem>>, vector<1x128xf32>
    %c0_3 = arith.constant 0 : index
    %c0_4 = arith.constant 0 : index
    %12 = vector.load %arg3[%c0_3, %c0_4] : memref<1x128xf32, #tpu.memory_space<vmem>>, vector<1x128xf32>
    %cst = arith.constant 1.000000e-01 : f32
    %13 = vector.broadcast %cst : f32 to vector<64x128xf32>
    %14 = arith.mulf %10, %13 : vector<64x128xf32>
    %15 = arith.mulf %14, %14 : vector<64x128xf32>
    %16 = arith.mulf %15, %14 : vector<64x128xf32>
    %17 = arith.mulf %16, %14 : vector<64x128xf32>
    %18 = arith.mulf %17, %14 : vector<64x128xf32>
    %cst_5 = arith.constant 1.000000e+00 : f32
    %19 = vector.broadcast %cst_5 : f32 to vector<64x128xf32>
    %20 = arith.cmpf olt, %14, %19 : vector<64x128xf32>
    %cst_6 = arith.constant 6.000000e+00 : f32
    %21 = vector.broadcast %cst_6 : f32 to vector<64x128xf32>
    %22 = arith.mulf %21, %18 : vector<64x128xf32>
    %cst_7 = arith.constant 1.000000e+00 : f32
    %23 = vector.broadcast %cst_7 : f32 to vector<64x128xf32>
    %24 = arith.subf %23, %22 : vector<64x128xf32>
    %cst_8 = arith.constant 1.500000e+01 : f32
    %25 = vector.broadcast %cst_8 : f32 to vector<64x128xf32>
    %26 = arith.mulf %25, %17 : vector<64x128xf32>
    %27 = arith.addf %24, %26 : vector<64x128xf32>
    %cst_9 = arith.constant 1.000000e+01 : f32
    %28 = vector.broadcast %cst_9 : f32 to vector<64x128xf32>
    %29 = arith.mulf %28, %16 : vector<64x128xf32>
    %30 = arith.subf %27, %29 : vector<64x128xf32>
    %cst_10 = arith.constant 0.000000e+00 : f32
    %31 = vector.broadcast %cst_10 : f32 to vector<64x128xf32>
    %32 = arith.select %20, %30, %31 : vector<64x128xi1>, vector<64x128xf32>
    %cst_11 = arith.constant 0.000000e+00 : f32
    %33 = vector.broadcast %cst_11 : f32 to vector<64x128xf32>
    %34 = arith.subf %33, %10 : vector<64x128xf32>
    %35 = math.exp %34 : vector<64x128xf32>
    %36 = vector.broadcast %11 : vector<1x128xf32> to vector<64x128xf32>
    %37 = arith.subf %35, %36 : vector<64x128xf32>
    %cst_12 = arith.constant 0.000000e+00 : f32
    %38 = vector.broadcast %cst_12 : f32 to vector<1x128xf32>
    %39 = arith.subf %38, %12 : vector<1x128xf32>
    %40 = vector.broadcast %39 : vector<1x128xf32> to vector<64x128xf32>
    %41 = arith.mulf %40, %37 : vector<64x128xf32>
    %42 = arith.mulf %41, %37 : vector<64x128xf32>
    %43 = math.exp %42 : vector<64x128xf32>
    %44 = arith.mulf %32, %43 : vector<64x128xf32>
    %c0_13 = arith.constant 0 : index
    %c0_14 = arith.constant 0 : index
    %45 = vector.load %arg4[%c0_13, %c0_14] : memref<64x128xf32, #tpu.memory_space<vmem>>, vector<64x128xf32>
    tpu.vector_store %arg4[%c0_13, %c0_14], %44 {strides = array<i32>} : memref<64x128xf32, #tpu.memory_space<vmem>>, vector<64x128xf32>,
    return
  }
  func.func @transform_0(%arg0: i32) -> (i32, i32) {
    %c0_i32 = arith.constant 0 : i32
    %c0_i32_0 = arith.constant 0 : i32
    return %arg0, %c0_i32 : i32, i32
  }
  func.func @transform_1(%arg0: i32) -> (i32, i32) {
    %c0_i32 = arith.constant 0 : i32
    %c0_i32_0 = arith.constant 0 : i32
    %c0_i32_1 = arith.constant 0 : i32
    return %c0_i32, %c0_i32_0 : i32, i32
  }
  func.func @transform_2(%arg0: i32) -> (i32, i32) {
    %c0_i32 = arith.constant 0 : i32
    %c0_i32_0 = arith.constant 0 : i32
    %c0_i32_1 = arith.constant 0 : i32
    return %c0_i32, %c0_i32_0 : i32, i32
  }
  func.func @transform_3(%arg0: i32) -> (i32, i32) {
    %c0_i32 = arith.constant 0 : i32
    %c0_i32_0 = arith.constant 0 : i32
    return %arg0, %c0_i32 : i32, i32
  }
}

</mosaic_0001>

<bundles_post_ra>
// kernel: tpu_custom_call.1
= control target key start
LH: loop header
LB: loop body
LE: loop exit
PB: predicated region body
PF: predicated region fallthrough
CT: control target
= control target key end

     0   :  { %v387_v2 = vmov 0   ;;  %s595_s0 = inlined_call_operand.vmem [shape: f32[64,2], index: 0, kind: input, shape index: {}]   ;;  %s596_s1 = inlined_call_operand.vmem [shape: f32[1,128], index: 1, kind: input, shape index: {}]   ;;  %s597_s2 = inlined_call_operand.vmem [shape: f32[1,128], index: 2, kind: input, shape index: {}]   ;;  %s598_s3 = inlined_call_operand.hbm [shape: f32[64,128], index: 3, kind: output, shape index: {}]  }
   0x1   :  { %v17_v0 = vld [vmem:[%s595_s0 + $0x10] sm:$0xff]  ;;  %v15_v1 = vld [vmem:[%s595_s0] sm:$0xff]  ;;  %328 = vset.pattern.permute.xlu1 %v387_v2  ;;  %327 = vset.pattern.permute.xlu0 %v387_v2 }
   0x2   :  { %35 = vperm.xlu1 %328, %v17_v0   ;;  %25 = vperm.xlu0 %327, %v15_v1  }
   0x3   :  { %8 = vsyncpa [#allocation3], 0  ;;  %v18_v3 = vld [vmem:[%s595_s0 + $0x18] sm:$0xff]  ;;  %v16_v4 = vld [vmem:[%s595_s0 + $0x8] sm:$0xff]  ;;  %v388_v9 = vmov 1   ;;  %v63_v14 = vlaneseq }
   0x4   :  { %v20_v5 = vld [vmem:[%s595_s0 + $0x28] sm:$0xff]  ;;  %v19_v6 = vld [vmem:[%s595_s0 + $0x20] sm:$0xff]  ;;  %v22_v7 = vld [vmem:[%s595_s0 + $0x38] sm:$0xff] }
   0x5   :  { %v21_v8 = vld [vmem:[%s595_s0 + $0x30] sm:$0xff]  ;;  %v438_v17 = vand.u32 127, %v63_v14  ;;  %v107_v39 = vld [vmem:[%s597_s2] sm:$0x1]  ;;  %v253_v40 = vshrl.u32 %v63_v14, 7 }
   0x6   :  { %40 = vperm.xlu1 %328, %v18_v3   ;;  %30 = vperm.xlu0 %327, %v16_v4   ;;  %v250_v48 = vsub.f32 0.0, %v107_v39  ;;  %v486_v57 = vld [vmem:[%s596_s1] ss:$0 sm:$0xff]  ;;  %s389_s1 = smov [#allocation2]  }
   0x7   :  { %vm65_vm0 = vcmp.ge.s32.totalorder %v438_v17, 64  ;;  %v254_v51 = vsub.s32 0, %v253_v40  ;;  %s310_s30 = sshll.u32 %s389_s1, 4  ;;  %s311_s30 = int_to_ptr.vmem [resolvable:$true] %s310_s30 }
   0x8   :  { %s363_s4 = scalar_lea.vmem %s311_s30, 1024  ;;  %p368_p1 = scmp.lt.s32.totalorder %s311_s30, %s311_s30 }
   0x9   :  { %v491_v59 = vrot.slane %v250_v48, %v254_v51  ;;  %p364_p0 = scmp.ne.s32.totalorder %s311_s30, %s363_s4  ;;  %p369_p2 = scmp.lt.s32.totalorder %s363_s4, %s363_s4 }
   0xa   :  { %50 = vperm.xlu1 %328, %v20_v5   ;;  %45 = vperm.xlu0 %327, %v19_v6  }
   0xb   :  { %p370_p3 = por %p369_p2, %p368_p1 }
   0xd   :  { %p371_p4 = pnand %p370_p3, %p364_p0 }
   0xe   :  { %60 = vperm.xlu1 %328, %v22_v7   ;;  %55 = vperm.xlu0 %327, %v21_v8  }
  0x12   :  { %330 = vset.pattern.permute.xlu1 %v388_v9  ;;  %329 = vset.pattern.permute.xlu0 %v388_v9 }
  0x13   :  { %71 = vperm.xlu1 %330, %v16_v4   ;;  %67 = vperm.xlu0 %329, %v15_v1  }
  0x17   :  { %75 = vperm.xlu1 %330, %v17_v0   ;;  %79 = vperm.xlu0 %329, %v18_v3  }
  0x1b   :  { %83 = vperm.xlu1 %330, %v19_v6   ;;  %87 = vperm.xlu0 %329, %v20_v5  }
  0x1f   :  { %91 = vperm.xlu1 %330, %v21_v8   ;;  %95 = vperm.xlu0 %329, %v22_v7  }
  0x81   :  { %v36_v10 = vpop.permute.xlu1 %35  ;;  %v26_v11 = vpop.permute.xlu0 %25 }
  0x85   :  { %v41_v12 = vpop.permute.xlu1 %40  ;;  %v31_v13 = vpop.permute.xlu0 %30 }
  0x89   :  { %v436_v15 = vpop.permute.xlu1 %50  ;;  %v46_v16 = vpop.permute.xlu0 %45 }
  0x8d   :  { %v440_v18 = vpop.permute.xlu1 %60  ;;  %v442_v19 = vpop.permute.xlu0 %55 }
  0x92   :  { %v72_v20 = vpop.permute.xlu1 %71  ;;  %v68_v21 = vpop.permute.xlu0 %67 }
  0x93   :  { %v99_v22 = vsel %vm65_vm0, %v72_v20, %v31_v13  ;;  %v98_v23 = vsel %vm65_vm0, %v68_v21, %v26_v11 }
  0x94   :  { %v449_v24 = vmul.f32 0.1, %v99_v22  ;;  %v213_v25 = vsub.f32 0.0, %v99_v22  ;;  %v451_v26 = vmul.f32 0.1, %v98_v23  ;;  %v212_v27 = vsub.f32 0.0, %v98_v23 }
  0x96   :  { %v117_v28 = vmul.f32 %v449_v24, %v449_v24  ;;  %v222_v29 = vmul.f32 1.442695, %v213_v25  ;;  %v116_v30 = vmul.f32 %v451_v26, %v451_v26  ;;  %v76_v31 = vpop.permute.xlu1 %75  ;;  %v80_v32 = vpop.permute.xlu0 %79  ;;  %v220_v33 = vmul.f32 1.442695, %v212_v27 }
  0x97   :  { %v100_v34 = vsel %vm65_vm0, %v76_v31, %v36_v10  ;;  %v101_v35 = vsel %vm65_vm0, %v80_v32, %v41_v12  ;;  %vm149_vm1 = vcmp.lt.f32.partialorder %v449_v24, 1.0  ;;  %vm148_vm2 = vcmp.lt.f32.partialorder %v451_v26, 1.0 }
  0x98   :  { %v125_v36 = vmul.f32 %v117_v28, %v449_v24  ;;  %331 = vpow2.f32 %v222_v29  ;;  %v124_v37 = vmul.f32 %v116_v30, %v451_v26  ;;  %v463_v38 = vmul.f32 0.1, %v100_v34 }
  0x99   :  { %333 = vpow2.f32 %v220_v33  ;;  %v214_v41 = vsub.f32 0.0, %v100_v34  ;;  %v468_v42 = vmul.f32 0.1, %v101_v35  ;;  %v215_v44 = vsub.f32 0.0, %v101_v35 }
  0x9a   :  { %v133_v43 = vmul.f32 %v125_v36, %v449_v24  ;;  %v132_v45 = vmul.f32 %v124_v37, %v451_v26  ;;  %v118_v46 = vmul.f32 %v463_v38, %v463_v38  ;;  %v84_v50 = vpop.permute.xlu1 %83  ;;  %v505_v10 = vmul.f32 10.0, %v125_v36  ;;  %v88_v22 = vpop.permute.xlu0 %87 }
  0x9b   :  { %v224_v47 = vmul.f32 1.442695, %v214_v41  ;;  %v119_v49 = vmul.f32 %v468_v42, %v468_v42  ;;  %v226_v54 = vmul.f32 1.442695, %v215_v44  ;;  %v102_v56 = vsel %vm65_vm0, %v84_v50, %v46_v16 }
  0x9c   :  { %v141_v52 = vmul.f32 %v133_v43, %v449_v24  ;;  %v478_v53 = vmul.f32 %v118_v46, %v463_v38  ;;  %v140_v55 = vmul.f32 %v132_v45, %v451_v26  ;;  %v495_v63 = vmul.f32 0.1, %v102_v56 }
  0x9d   :  { %335 = vpow2.f32 %v224_v47  ;;  %v489_v58 = vmul.f32 %v119_v49, %v468_v42  ;;  %v216_v3 = vsub.f32 0.0, %v102_v56  ;;  %v173_v14 = vmul.f32 15.0, %v133_v43 }
  0x9e   :  { %337 = vpow2.f32 %v226_v54  ;;  %v157_v60 = vmul.f32 6.0, %v141_v52  ;;  %v134_v61 = vmul.f32 %v478_v53, %v463_v38  ;;  %v156_v2 = vmul.f32 6.0, %v140_v55  ;;  %v96_v49 = vpop.permute.xlu0 %95 }
  0x9f   :  { %v501_v5 = vmul.f32 %v489_v58, %v468_v42  ;;  %v228_v9 = vmul.f32 1.442695, %v216_v3  ;;  %v120_v12 = vmul.f32 %v495_v63, %v495_v63  ;;  %v188_v21 = vmul.f32 10.0, %v124_v37  ;;  %v92_v37 = vpop.permute.xlu1 %91 }
  0xa0   :  { %v165_v6 = vsub.f32 1.0, %v157_v60  ;;  %v142_v8 = vmul.f32 %v134_v61, %v463_v38  ;;  %v164_v20 = vsub.f32 1.0, %v156_v2  ;;  %v172_v23 = vmul.f32 15.0, %v132_v45 }
  0xa1   :  { %v143_v28 = vmul.f32 %v501_v5, %v468_v42  ;;  %339 = vpow2.f32 %v228_v9  ;;  %v515_v35 = vmul.f32 %v120_v12, %v495_v63  ;;  %v103_v36 = vsel %vm65_vm0, %v88_v22, %v436_v15 }
  0xa2   :  { %v332_v62 = vpop.eup %331  ;;  %v181_v29 = vadd.f32 %v173_v14, %v165_v6  ;;  %v158_v31 = vmul.f32 6.0, %v142_v8  ;;  %v180_v39 = vadd.f32 %v172_v23, %v164_v20  ;;  %v174_v40 = vmul.f32 15.0, %v134_v61 }
  0xa3   :  { %v334_v0 = vpop.eup %333  ;;  %v243_v1 = vsub.f32 %v332_v62, %v486_v57  ;;  %v159_v44 = vmul.f32 6.0, %v143_v28  ;;  %v522_v45 = vmul.f32 0.1, %v103_v36  ;;  %v217_v48 = vsub.f32 0.0, %v103_v36 }
  0xa4   :  { %v242_v4 = vsub.f32 %v334_v0, %v486_v57  ;;  %v166_v46 = vsub.f32 1.0, %v158_v31  ;;  %v104_v15 = vsel %vm65_vm0, %v92_v37, %v442_v19  ;;  %v197_v50 = vsub.f32 %v181_v29, %v505_v10 }
  0xa5   :  { %v258_v7 = vmul.f32 %v491_v59, %v243_v1  ;;  %v136_v52 = vmul.f32 %v515_v35, %v495_v63  ;;  %v121_v54 = vmul.f32 %v522_v45, %v522_v45  ;;  %v230_v56 = vmul.f32 1.442695, %v217_v48 }
  0xa6   :  { %v257_v11 = vmul.f32 %v491_v59, %v242_v4  ;;  %v533_v60 = vmul.f32 0.1, %v104_v15  ;;  %v218_v61 = vsub.f32 0.0, %v104_v15  ;;  %v196_v62 = vsub.f32 %v180_v39, %v188_v21 }
  0xa7   :  { %v336_v13 = vpop.eup %335  ;;  %v266_v16 = vmul.f32 %v258_v7, %v243_v1  ;;  %v167_v0 = vsub.f32 1.0, %v159_v44  ;;  %v105_v19 = vsel %vm65_vm0, %v96_v49, %v440_v18  ;;  %v182_v1 = vadd.f32 %v174_v40, %v166_v46 }
  0xa8   :  { %v265_v25 = vmul.f32 %v257_v11, %v242_v4  ;;  %v244_v27 = vsub.f32 %v336_v13, %v486_v57  ;;  %v338_v32 = vpop.eup %337  ;;  %v122_v3 = vmul.f32 %v533_v60, %v533_v60  ;;  %v144_v4 = vmul.f32 %v136_v52, %v495_v63 }
  0xa9   :  { %v275_v30 = vmul.f32 1.442695, %v266_v16  ;;  %v245_v41 = vsub.f32 %v338_v32, %v486_v57  ;;  %v543_v6 = vmul.f32 %v121_v54, %v522_v45  ;;  %v232_v7 = vmul.f32 1.442695, %v218_v61 }
  0xaa   :  { %v273_v33 = vmul.f32 1.442695, %v265_v25  ;;  %v259_v34 = vmul.f32 %v491_v59, %v244_v27  ;;  %v190_v9 = vmul.f32 10.0, %v478_v53  ;;  %v175_v17 = vmul.f32 15.0, %v501_v5 }
  0xab   :  { %341 = vpow2.f32 %v275_v30  ;;  %v260_v47 = vmul.f32 %v491_v59, %v245_v41  ;;  %v340_v8 = vpop.eup %339  ;;  %v547_v18 = vmul.f32 0.1, %v105_v19  ;;  %v205_v10 = vsel %vm149_vm1, %v197_v50, 0.0 }
  0xac   :  { %343 = vpow2.f32 %v273_v33  ;;  %v267_v43 = vmul.f32 %v259_v34, %v244_v27  ;;  %v204_v11 = vsel %vm148_vm2, %v196_v62, 0.0  ;;  %v246_v26 = vsub.f32 %v340_v8, %v486_v57 }
  0xad   :  { %v268_v55 = vmul.f32 %v260_v47, %v245_v41  ;;  %v198_v13 = vsub.f32 %v182_v1, %v190_v9  ;;  %v183_v14 = vadd.f32 %v175_v17, %v167_v0  ;;  %v553_v16 = vmul.f32 %v122_v3, %v533_v60 }
  0xae   :  { %v277_v51 = vmul.f32 1.442695, %v267_v43  ;;  %v219_v20 = vsub.f32 0.0, %v105_v19  ;;  %v160_v5 = vmul.f32 6.0, %v144_v4  ;;  %v261_v22 = vmul.f32 %v491_v59, %v246_v26 }
  0xaf   :  { %v279_v2 = vmul.f32 1.442695, %v268_v55  ;;  %v137_v24 = vmul.f32 %v543_v6, %v522_v45  ;;  %v191_v25 = vmul.f32 10.0, %v489_v58  ;;  %v123_v27 = vmul.f32 %v547_v18, %v547_v18 }
  0xb0   :  { %345 = vpow2.f32 %v277_v51  ;;  %vm150_vm3 = vcmp.lt.f32.partialorder %v463_v38, 1.0  ;;  %v269_v28 = vmul.f32 %v261_v22, %v246_v26  ;;  %v234_v29 = vmul.f32 1.442695, %v219_v20 }
  0xb1   :  { %347 = vpow2.f32 %v230_v56  ;;  %v206_v30 = vsel %vm150_vm3, %v198_v13, 0.0  ;;  %v199_v31 = vsub.f32 %v183_v14, %v191_v25  ;;  %v138_v32 = vmul.f32 %v553_v16, %v533_v60 }
  0xb2   :  { %349 = vpow2.f32 %v279_v2  ;;  %v168_v34 = vsub.f32 1.0, %v160_v5  ;;  %v281_v36 = vmul.f32 1.442695, %v269_v28  ;;  %v145_v37 = vmul.f32 %v137_v24, %v522_v45 }
  0xb3   :  { %351 = vpow2.f32 %v232_v7  ;;  %v131_v40 = vmul.f32 %v123_v27, %v547_v18  ;;  %vm151_vm4 = vcmp.lt.f32.partialorder %v468_v42, 1.0  ;;  %v176_v38 = vmul.f32 15.0, %v136_v52 }
  0xb4   :  { %353 = vpow2.f32 %v234_v29  ;;  %v207_v44 = vsel %vm151_vm4, %v199_v31, 0.0  ;;  %v146_v46 = vmul.f32 %v138_v32, %v533_v60  ;;  %v161_v49 = vmul.f32 6.0, %v145_v37 }
  0xb5   :  { %v342_v12 = vpop.eup %341  ;;  %355 = vpow2.f32 %v281_v36  ;;  %v184_v15 = vadd.f32 %v176_v38, %v168_v34  ;;  %v139_v54 = vmul.f32 %v131_v40, %v547_v18  ;;  %v192_v42 = vmul.f32 10.0, %v515_v35 }
  0xb6   :  { %v344_v53 = vpop.eup %343  ;;  %v290_v21 = vmul.f32 %v342_v12, %v205_v10  ;;  %v162_v55 = vmul.f32 6.0, %v146_v46  ;;  %v169_v62 = vsub.f32 1.0, %v161_v49  ;;  %v177_v3 = vmul.f32 15.0, %v137_v24 }
  0xb7   :  { %v289_v23 = vmul.f32 %v344_v53, %v204_v11  ;;  %v200_v61 = vsub.f32 %v184_v15, %v192_v42  ;;  %v147_v1 = vmul.f32 %v139_v54, %v547_v18  ;;  %vm152_vm5 = vcmp.lt.f32.partialorder %v495_v63, 1.0 }
  0xb8   :  { %298 = vst [vmem:[#allocation2 + $0x8] sm:$0xff] %v290_v21  ;;  %v170_v4 = vsub.f32 1.0, %v162_v55  ;;  %v185_v17 = vadd.f32 %v177_v3, %v169_v62  ;;  %v178_v10 = vmul.f32 15.0, %v138_v32  ;;  %v193_v13 = vmul.f32 10.0, %v543_v6 }
  0xb9   :  { %297 = vst [vmem:[#allocation2] sm:$0xff] %v289_v23  ;;  %v208_v9 = vsel %vm152_vm5, %v200_v61, 0.0  ;;  %v163_v26 = vmul.f32 6.0, %v147_v1  ;;  %v194_v63 = vmul.f32 10.0, %v553_v16  ;;  %vm153_vm6 = vcmp.lt.f32.partialorder %v522_v45, 1.0 }
  0xba   :  { %v346_v33 = vpop.eup %345  ;;  %v186_v14 = vadd.f32 %v178_v10, %v170_v4  ;;  %v201_v53 = vsub.f32 %v185_v17, %v193_v13  ;;  %v179_v22 = vmul.f32 15.0, %v139_v54  ;;  %vm154_vm7 = vcmp.lt.f32.partialorder %v533_v60, 1.0 }
  0xbb   :  { %v348_v58 = vpop.eup %347  ;;  %v291_v39 = vmul.f32 %v346_v33, %v206_v30  ;;  %v171_v21 = vsub.f32 1.0, %v163_v26  ;;  %v195_v28 = vmul.f32 10.0, %v131_v40  ;;  %vm155_vm8 = vcmp.lt.f32.partialorder %v547_v18, 1.0 }
  0xbc   :  { %v247_v41 = vsub.f32 %v348_v58, %v486_v57  ;;  %v350_v43 = vpop.eup %349  ;;  %v209_v23 = vsel %vm153_vm6, %v201_v53, 0.0 }
  0xbd   :  { %299 = vst [vmem:[#allocation2 + $0x10] sm:$0xff] %v291_v39  ;;  %v352_v47 = vpop.eup %351  ;;  %v292_v48 = vmul.f32 %v350_v43, %v207_v44  ;;  %v187_v27 = vadd.f32 %v179_v22, %v171_v21 }
  0xbe   :  { %v262_v50 = vmul.f32 %v491_v59, %v247_v41  ;;  %v248_v51 = vsub.f32 %v352_v47, %v486_v57  ;;  %v354_v2 = vpop.eup %353 }
  0xbf   :  { %300 = vst [vmem:[#allocation2 + $0x18] sm:$0xff] %v292_v48  ;;  %v249_v8 = vsub.f32 %v354_v2, %v486_v57  ;;  %v356_v35 = vpop.eup %355  ;;  %v202_v57 = vsub.f32 %v186_v14, %v194_v63  ;;  %v203_v30 = vsub.f32 %v187_v27, %v195_v28 }
  0xc0   :  { %v270_v52 = vmul.f32 %v262_v50, %v247_v41  ;;  %v263_v56 = vmul.f32 %v491_v59, %v248_v51  ;;  %v293_v11 = vmul.f32 %v356_v35, %v208_v9 }
  0xc1   :  { %v264_v12 = vmul.f32 %v491_v59, %v249_v8  ;;  %v210_v6 = vsel %vm154_vm7, %v202_v57, 0.0  ;;  %v211_v16 = vsel %vm155_vm8, %v203_v30, 0.0 }
  0xc2   :  { %v283_v0 = vmul.f32 1.442695, %v270_v52  ;;  %v271_v19 = vmul.f32 %v263_v56, %v248_v51  ;;  %301 = vst [vmem:[#allocation2 + $0x20] sm:$0xff] %v293_v11 }
  0xc3   :  { %v272_v20 = vmul.f32 %v264_v12, %v249_v8 }
  0xc4   :  { %357 = vpow2.f32 %v283_v0  ;;  %v285_v7 = vmul.f32 1.442695, %v271_v19 }
  0xc5   :  { %v287_v5 = vmul.f32 1.442695, %v272_v20 }
  0xc6   :  { %359 = vpow2.f32 %v285_v7 }
  0xc7   :  { %361 = vpow2.f32 %v287_v5 }
  0xce   :  { %v358_v24 = vpop.eup %357 }
  0xcf   :  { %v294_v25 = vmul.f32 %v358_v24, %v209_v23 }
  0xd0   :  { %v360_v59 = vpop.eup %359 }
  0xd1   :  { %302 = vst [vmem:[#allocation2 + $0x28] sm:$0xff] %v294_v25  ;;  %v295_v29 = vmul.f32 %v360_v59, %v210_v6  ;;  %v362_v45 = vpop.eup %361 }
  0xd2   :  { %v296_v31 = vmul.f32 %v362_v45, %v211_v16 }
  0xd3   :  { %303 = vst [vmem:[#allocation2 + $0x30] sm:$0xff] %v295_v29 }
  0xd4   :  { %304 = vst [vmem:[#allocation2 + $0x38] sm:$0xff] %v296_v31 }
  0xd5   :  { %374 = shalt.err (!%p371_p4)
}
  0xd6   :  { %s375_s7 = scalar_lea.hbm %s598_s3, 1024 }
  0xd7   :  { %p376_p5 = scmp.ne.s32.totalorder %s598_s3, %s375_s7  ;;  %p379_p6 = scmp.lt.u32.totalorder %s375_s7, %s598_s3 }
  0xd9   :  { %p381_p7 = pnand %p379_p6, %p376_p5 }
  0xdb   :  { %384 = shalt.err (!%p381_p7)
}
  0xdc   :  { %s390_s12 = smov 128   ;;  %s391_s13 = smov 8  }
  0xdd   :  { %316 = dma.vmem_to_hbm [thread:$0]  %s311_s30, 1024, %s598_s3, [#allocation3], %s390_s12, %s390_s12, %s391_s13  }
  0xde   :  { %385 = dma.done.wait [#allocation3], 1024  }
  0xdf   :  { %386 = vsyncadd [#allocation3], 4294966272 }
  0xe0   :  { %320 = vsyncpa [#allocation3], 1 }

</bundles_post_ra>
